<compile_context>
chip_gen: v7x
topology: tpu7x:2x2x1
jax: 0.10.0
libtpu: 0.0.40
codegen_flags: <defaults>
</compile_context>

<pallas_src>
import functools

import jax
import jax.numpy as jnp
from jax import lax
from jax.experimental import pallas as pl
from jax.experimental.pallas import tpu as pltpu


# ----------------------------------------------------------------------------
# Dropout kernel (elementwise). Random bits are precomputed with
# jax.random.bits and compared against an integer threshold (no f32 convert).
# NOTE: the mask will not bit-match PyTorch's RNG (expected).
# ----------------------------------------------------------------------------
def _dropout_kernel(x_ref, bits_ref, o_ref, *, threshold, scale):
    keep = bits_ref[...] >= jnp.uint32(threshold)
    kept = x_ref[...].astype(jnp.float32) * jnp.float32(scale)
    o_ref[...] = jnp.where(keep, kept, jnp.float32(0.0)).astype(o_ref.dtype)


def _pick_block_rows(rows, cap=1024):
    # Largest divisor of `rows` that is <= cap and satisfies the (8, 128)
    # block constraint (multiple of 8, or the full extent).
    for c in range(min(cap, rows), 0, -1):
        if rows % c == 0 and (c % 8 == 0 or c == rows):
            return c
    return rows


def dropout_pallas(z, rate, key):
    """Inverted dropout: keep with prob (1-rate), scale kept values by 1/(1-rate)."""
    if rate <= 0.0:
        return z
    N, D = z.shape
    total = N * D

    # Lane-dense view for the elementwise pass when possible (D may be < 128).
    if total % 128 == 0 and (total // 128) % 8 == 0:
        x = z.reshape(total // 128, 128)
    else:
        x = z
    rows, cols = x.shape
    block_rows = _pick_block_rows(rows)

    bits = jax.random.bits(key, (rows, cols), dtype=jnp.uint32)
    threshold = min(int(round(float(rate) * (1 << 32))), (1 << 32) - 1)
    scale = 1.0 / (1.0 - float(rate))

    out = pl.pallas_call(
        functools.partial(_dropout_kernel, threshold=threshold, scale=scale),
        out_shape=jax.ShapeDtypeStruct((rows, cols), z.dtype),
        grid=(rows // block_rows,),
        in_specs=[
            pl.BlockSpec((block_rows, cols), lambda i: (i, 0)),
            pl.BlockSpec((block_rows, cols), lambda i: (i, 0)),
        ],
        out_specs=pl.BlockSpec((block_rows, cols), lambda i: (i, 0)),
        compiler_params=pltpu.CompilerParams(dimension_semantics=("parallel",)),
    )(x, bits)
    return out.reshape(N, D)


# ----------------------------------------------------------------------------
# Inner-product decoder: adj = sigmoid(z @ z.T), tiled over (row, col) blocks
# of the output. D is small, so the full embedding dim is one block (no K
# reduction axis).
# ----------------------------------------------------------------------------
def _inner_product_kernel_resident(zrow_ref, zall_ref, o_ref, *, tn):
    # Column operand: slice tn rows out of the fully VMEM-resident z.
    j = pl.program_id(1)
    zcol = zall_ref[pl.ds(j * tn, tn), :]
    s = lax.dot_general(
        zrow_ref[...], zcol,
        dimension_numbers=(((1,), (1,)), ((), ())),     # NT matmul, no .T
        preferred_element_type=jnp.float32)
    o_ref[...] = jax.nn.sigmoid(s).astype(o_ref.dtype)


def _inner_product_kernel_blocked(zrow_ref, zcol_ref, o_ref):
    s = lax.dot_general(
        zrow_ref[...], zcol_ref[...],
        dimension_numbers=(((1,), (1,)), ((), ())),
        preferred_element_type=jnp.float32)
    o_ref[...] = jax.nn.sigmoid(s).astype(o_ref.dtype)


def inner_product_decoder(z, *, dropout=0.0, training=False, rng_key=None,
                          tm=256, tn=1024, out_dtype=None):
    """adj = sigmoid(dropout(z) @ dropout(z).T)  — z: [N, D] -> adj: [N, N]."""
    N, D = z.shape
    out_dtype = z.dtype if out_dtype is None else out_dtype

    if training and dropout > 0.0:
        if rng_key is None:
            rng_key = jax.random.PRNGKey(0)
        z = dropout_pallas(z, dropout, rng_key)

    # Clamp tiles to N (small-N fast path collapses to a single grid step).
    tm = min(tm, N)
    tn = min(tn, N)
    assert N % tm == 0 and N % tn == 0, "N must be divisible by tile sizes"

    # Keep the column operand fully VMEM-resident when it is small (kills the
    # redundant per-step column DMA traffic); otherwise fall back to blocking.
    resident = (N * D * z.dtype.itemsize) <= (8 * 1024 * 1024)
    if resident:
        kernel = functools.partial(_inner_product_kernel_resident, tn=tn)
        col_spec = pl.BlockSpec((N, D), lambda i, j: (0, 0))
    else:
        kernel = _inner_product_kernel_blocked
        col_spec = pl.BlockSpec((tn, D), lambda i, j: (j, 0))

    cost = pl.CostEstimate(
        flops=2 * N * N * D,
        transcendentals=N * N,
        bytes_accessed=N * N * jnp.dtype(out_dtype).itemsize
        + 2 * N * D * z.dtype.itemsize,
    )

    return pl.pallas_call(
        kernel,
        out_shape=jax.ShapeDtypeStruct((N, N), out_dtype),
        grid=(N // tm, N // tn),
        in_specs=[
            pl.BlockSpec((tm, D), lambda i, j: (i, 0)),   # row block of z
            col_spec,                                     # resident / col block
        ],
        out_specs=pl.BlockSpec((tm, tn), lambda i, j: (i, j)),
        compiler_params=pltpu.CompilerParams(
            dimension_semantics=("parallel", "parallel")),
        cost_estimate=cost,
    )(z, z)


if __name__ == "__main__":
    # InnerProductDecoder has no learned parameters — only `dropout` and the
    # activation (sigmoid).
    key = jax.random.PRNGKey(0)
    kz, kd = jax.random.split(key)
    N, D = 256, 32
    z = jax.random.normal(kz, (N, D), dtype=jnp.float32)

    # Eval-mode forward (dropout is identity) — matches torch semantics.
    adj = inner_product_decoder(z, dropout=0.5, training=False)
    adj = jax.block_until_ready(adj)
    ref = jax.nn.sigmoid(z @ z.T)
    assert adj.shape == (N, N)
    assert jnp.allclose(adj, ref, atol=2e-5, rtol=1e-4), "mismatch vs reference"

    # Dropout sanity: every output element is either 0 or 2*z (rate=0.5).
    zd = jax.block_until_ready(dropout_pallas(z, 0.5, kd))
    ok = jnp.logical_or(zd == 0.0, jnp.isclose(zd, 2.0 * z, atol=1e-6, rtol=1e-6))
    assert bool(jnp.all(ok)), "dropout output not in {0, z/(1-p)}"

    # Training-mode forward (dropout active) exercised once.
    adj_train = inner_product_decoder(z, dropout=0.5, training=True, rng_key=kd)
    adj_train = jax.block_until_ready(adj_train)
    assert adj_train.shape == (N, N)
    assert bool(jnp.all(jnp.isfinite(adj_train)))

    print("KERNEL_OK")
</pallas_src>

<mosaic_0001>
module attributes {stable_mosaic.version = 11 : i64} {
  func.func @_inner_product_kernel_resident(%arg0: i32, %arg1: i32, %arg2: memref<256x32xf32, #tpu.memory_space<vmem>>, %arg3: memref<256x32xf32, #tpu.memory_space<vmem>>, %arg4: memref<256x256xf32, #tpu.memory_space<vmem>>) attributes {dimension_semantics = [#tpu.dimension_semantics<parallel>, #tpu.dimension_semantics<parallel>], iteration_bounds = array<i64: 1, 1>, scalar_prefetch = 0 : i64, scratch_operands = 0 : i64, tpu.core_type = #tpu.core_type<tc>, window_params = [{transform_indices = @transform_0, window_bounds = array<i64: 256, 32>}, {pipeline_mode = #tpu.pipeline_mode<synchronous>, transform_indices = @transform_1, window_bounds = array<i64: 256, 32>}, {transform_indices = @transform_2, window_bounds = array<i64: 256, 256>}]} {
    %c256_i32 = arith.constant 256 : i32
    %0 = arith.muli %arg1, %c256_i32 : i32
    %1 = arith.index_cast %0 : i32 to index
    %c0 = arith.constant 0 : index
    %2 = vector.load %arg3[%1, %c0] : memref<256x32xf32, #tpu.memory_space<vmem>>, vector<256x32xf32>
    %c0_0 = arith.constant 0 : index
    %c0_1 = arith.constant 0 : index
    %3 = vector.load %arg2[%c0_0, %c0_1] : memref<256x32xf32, #tpu.memory_space<vmem>>, vector<256x32xf32>
    %cst = arith.constant dense<0.000000e+00> : vector<256x256xf32>
    %4 = tpu.matmul %3, %2, %cst {dimension_numbers = #tpu.dot_dimension_numbers<[1], [1], [0], [0], [0, 0, 1, 0], [], []>} : vector<256x32xf32>, vector<256x32xf32>, vector<256x256xf32> -> vector<256x256xf32>
    %5 = arith.negf %4 : vector<256x256xf32>
    %6 = math.exp %5 : vector<256x256xf32>
    %cst_2 = arith.constant 1.000000e+00 : f32
    %7 = vector.broadcast %cst_2 : f32 to vector<256x256xf32>
    %8 = arith.addf %7, %6 : vector<256x256xf32>
    %9 = arith.divf %7, %8 : vector<256x256xf32>
    %c0_3 = arith.constant 0 : index
    %c0_4 = arith.constant 0 : index
    %10 = vector.load %arg4[%c0_3, %c0_4] : memref<256x256xf32, #tpu.memory_space<vmem>>, vector<256x256xf32>
    tpu.vector_store %arg4[%c0_3, %c0_4], %9 {strides = array<i32>} : memref<256x256xf32, #tpu.memory_space<vmem>>, vector<256x256xf32>,
    return
  }
  func.func @transform_0(%arg0: i32, %arg1: i32) -> (i32, i32) {
    %c0_i32 = arith.constant 0 : i32
    %c0_i32_0 = arith.constant 0 : i32
    return %arg0, %c0_i32 : i32, i32
  }
  func.func @transform_1(%arg0: i32, %arg1: i32) -> (i32, i32) {
    %c0_i32 = arith.constant 0 : i32
    %c0_i32_0 = arith.constant 0 : i32
    %c0_i32_1 = arith.constant 0 : i32
    return %c0_i32, %c0_i32_0 : i32, i32
  }
  func.func @transform_2(%arg0: i32, %arg1: i32) -> (i32, i32) {
    %c0_i32 = arith.constant 0 : i32
    return %arg0, %arg1 : i32, i32
  }
}

</mosaic_0001>

<bundles_post_ra>
// kernel: tpu_custom_call.1
= control target key start
LH: loop header
LB: loop body
LE: loop exit
PB: predicated region body
PF: predicated region fallthrough
CT: control target
= control target key end

     0   :  { %vm78_vm0 = vcmask 261120   ;;  %s2044_s0 = inlined_call_operand.vmem [shape: f32[256,32], index: 0, kind: input, shape index: {}]   ;;  %s2045_s1 = inlined_call_operand.vmem [shape: f32[256,32], index: 1, kind: input, shape index: {}]   ;;  %s2046_s2 = inlined_call_operand.hbm [shape: f32[256,256], index: 2, kind: output, shape index: {}]  }
   0x1   :  { %v30_v0 = vld [vmem:[%s2045_s1 + $0x80] sm:$0xff]  ;;  %v31_v1 = vld [vmem:[%s2045_s1 + $0x88] sm:$0xff]  ;;  %vm1592_vm1 = vmpackc.low %vm78_vm0, %vm78_vm0 }
   0x2   :  { %v14_v2 = vld [vmem:[%s2045_s1] sm:$0xff]  ;;  %v1216_v3 = vpack.c.bf16 %v31_v1, %v30_v0  ;;  %v15_v5 = vld [vmem:[%s2045_s1 + $0x8] sm:$0xff]  ;;  %v32_v6 = vld [vmem:[%s2045_s1 + $0x90] sm:$0xff] }
   0x3   :  { %v1219_v7 = vpack.c.bf16 %v15_v5, %v14_v2  ;;  %v33_v8 = vld [vmem:[%s2045_s1 + $0x98] sm:$0xff]  ;;  %v16_v10 = vld [vmem:[%s2045_s1 + $0x10] sm:$0xff]  ;;  %v34_v12 = vld [vmem:[%s2045_s1 + $0xa0] sm:$0xff] }
   0x4   :  { %1218 = vmatprep.subr.msk.bf16.mxu0 %vm1592_vm1, %v1216_v3  ;;  %1264 = vmatprep.subr.msk.bf16.mxu1 %vm1592_vm1, %v1216_v3  ;;  %v1222_v9 = vpack.c.bf16 %v33_v8, %v32_v6  ;;  %v17_v11 = vld [vmem:[%s2045_s1 + $0x18] sm:$0xff]  ;;  %v35_v13 = vld [vmem:[%s2045_s1 + $0xa8] sm:$0xff]  ;;  %v1632_v16 = vld [vmem:[%s2044_s0] sm:$0xff] }
   0x5   :  { %1221 = vmatpush3.bf16.xpose.msk.msra.mxu0 %vm1592_vm1, %v1219_v7  ;;  %1272 = vmatpush3.bf16.xpose.msk.msra.mxu1 %vm1592_vm1, %v1219_v7  ;;  %v1225_v14 = vpack.c.bf16 %v17_v11, %v16_v10  ;;  %v1228_v15 = vpack.c.bf16 %v35_v13, %v34_v12  ;;  %v1637_v17 = vld [vmem:[%s2044_s0 + $0x80] sm:$0xff]  ;;  %v19_v19 = vld [vmem:[%s2045_s1 + $0x28] sm:$0xff]  ;;  %v36_v20 = vld [vmem:[%s2045_s1 + $0xb0] sm:$0xff] }
   0x6   :  { %1224 = vmatprep.subr.msk.bf16.mxu0 %vm1592_vm1, %v1222_v9  ;;  %1265 = vmatprep.subr.msk.bf16.mxu1 %vm1592_vm1, %v1222_v9  ;;  %v18_v18 = vld [vmem:[%s2045_s1 + $0x20] sm:$0xff]  ;;  %v37_v21 = vld [vmem:[%s2045_s1 + $0xb8] sm:$0xff]  ;;  %v20_v24 = vld [vmem:[%s2045_s1 + $0x30] sm:$0xff] }
   0x7   :  { %1152 = vmatprep.mubr.msk.f32.mxu0 %vm78_vm0, %v1632_v16  ;;  %1184 = vmatprep.mubr.msk.f32.mxu1 %vm78_vm0, %v1637_v17  ;;  %v1231_v22 = vpack.c.bf16 %v19_v19, %v18_v18  ;;  %v1234_v23 = vpack.c.bf16 %v37_v21, %v36_v20  ;;  %v21_v25 = vld [vmem:[%s2045_s1 + $0x38] sm:$0xff] }
   0xd   :  { %1227 = vmatpush3.bf16.xpose.msk.msra.mxu0 %vm1592_vm1, %v1225_v14  ;;  %1273 = vmatpush3.bf16.xpose.msk.msra.mxu1 %vm1592_vm1, %v1225_v14 }
   0xe   :  { %1230 = vmatprep.subr.msk.bf16.mxu0 %vm1592_vm1, %v1228_v15  ;;  %1266 = vmatprep.subr.msk.bf16.mxu1 %vm1592_vm1, %v1228_v15 }
  0x15   :  { %1233 = vmatpush3.bf16.xpose.msk.msra.mxu0 %vm1592_vm1, %v1231_v22  ;;  %1274 = vmatpush3.bf16.xpose.msk.msra.mxu1 %vm1592_vm1, %v1231_v22 }
  0x16   :  { %1236 = vmatprep.subr.msk.bf16.mxu0 %vm1592_vm1, %v1234_v23  ;;  %1267 = vmatprep.subr.msk.bf16.mxu1 %vm1592_vm1, %v1234_v23 }
  0x17   :  { %7 = vsyncpa [#allocation3], 0  ;;  %v38_v26 = vld [vmem:[%s2045_s1 + $0xc0] sm:$0xff]  ;;  %v39_v27 = vld [vmem:[%s2045_s1 + $0xc8] sm:$0xff]  ;;  %v1237_v28 = vpack.c.bf16 %v21_v25, %v20_v24 }
  0x18   :  { %v1240_v29 = vpack.c.bf16 %v39_v27, %v38_v26  ;;  %v22_v30 = vld [vmem:[%s2045_s1 + $0x40] sm:$0xff]  ;;  %v23_v31 = vld [vmem:[%s2045_s1 + $0x48] sm:$0xff]  ;;  %v40_v32 = vld [vmem:[%s2045_s1 + $0xd0] sm:$0xff] }
  0x19   :  { %v41_v33 = vld [vmem:[%s2045_s1 + $0xd8] sm:$0xff]  ;;  %v1243_v34 = vpack.c.bf16 %v23_v31, %v22_v30  ;;  %v24_v36 = vld [vmem:[%s2045_s1 + $0x50] sm:$0xff]  ;;  %v42_v38 = vld [vmem:[%s2045_s1 + $0xe0] sm:$0xff] }
  0x1a   :  { %v1246_v35 = vpack.c.bf16 %v41_v33, %v40_v32  ;;  %v25_v37 = vld [vmem:[%s2045_s1 + $0x58] sm:$0xff]  ;;  %v43_v39 = vld [vmem:[%s2045_s1 + $0xe8] sm:$0xff]  ;;  %v26_v42 = vld [vmem:[%s2045_s1 + $0x60] sm:$0xff] }
  0x1b   :  { %v1249_v40 = vpack.c.bf16 %v25_v37, %v24_v36  ;;  %v1252_v41 = vpack.c.bf16 %v43_v39, %v42_v38  ;;  %v27_v43 = vld [vmem:[%s2045_s1 + $0x68] sm:$0xff]  ;;  %v44_v44 = vld [vmem:[%s2045_s1 + $0xf0] sm:$0xff]  ;;  %v45_v45 = vld [vmem:[%s2045_s1 + $0xf8] sm:$0xff] }
  0x1c   :  { %v1255_v46 = vpack.c.bf16 %v27_v43, %v26_v42  ;;  %v1258_v47 = vpack.c.bf16 %v45_v45, %v44_v44  ;;  %v28_v48 = vld [vmem:[%s2045_s1 + $0x70] sm:$0xff]  ;;  %v29_v49 = vld [vmem:[%s2045_s1 + $0x78] sm:$0xff]  ;;  %v47_v51 = vld [vmem:[%s2044_s0 + $0x8] sm:$0xff] }
  0x1d   :  { %1239 = vmatpush3.bf16.xpose.msk.msra.mxu0 %vm1592_vm1, %v1237_v28  ;;  %1275 = vmatpush3.bf16.xpose.msk.msra.mxu1 %vm1592_vm1, %v1237_v28  ;;  %v1261_v50 = vpack.c.bf16 %v29_v49, %v28_v48  ;;  %v63_v52 = vld [vmem:[%s2044_s0 + $0x88] sm:$0xff]  ;;  %v48_v53 = vld [vmem:[%s2044_s0 + $0x10] sm:$0xff]  ;;  %v49_v55 = vld [vmem:[%s2044_s0 + $0x18] sm:$0xff] }
  0x1e   :  { %1242 = vmatprep.subr.msk.bf16.mxu0 %vm1592_vm1, %v1240_v29  ;;  %1268 = vmatprep.subr.msk.bf16.mxu1 %vm1592_vm1, %v1240_v29  ;;  %v64_v54 = vld [vmem:[%s2044_s0 + $0x90] sm:$0xff]  ;;  %v65_v56 = vld [vmem:[%s2044_s0 + $0x98] sm:$0xff]  ;;  %v50_v57 = vld [vmem:[%s2044_s0 + $0x20] sm:$0xff] }
  0x1f   :  { %v66_v58 = vld [vmem:[%s2044_s0 + $0xa0] sm:$0xff]  ;;  %v51_v59 = vld [vmem:[%s2044_s0 + $0x28] sm:$0xff]  ;;  %v52_v61 = vld [vmem:[%s2044_s0 + $0x30] sm:$0xff] }
  0x20   :  { %v67_v60 = vld [vmem:[%s2044_s0 + $0xa8] sm:$0xff]  ;;  %v68_v62 = vld [vmem:[%s2044_s0 + $0xb0] sm:$0xff]  ;;  %v53_v63 = vld [vmem:[%s2044_s0 + $0x38] sm:$0xff] }
  0x21   :  { %v69_v0 = vld [vmem:[%s2044_s0 + $0xb8] sm:$0xff]  ;;  %v54_v1 = vld [vmem:[%s2044_s0 + $0x40] sm:$0xff]  ;;  %v55_v3 = vld [vmem:[%s2044_s0 + $0x48] sm:$0xff] }
  0x22   :  { %v70_v2 = vld [vmem:[%s2044_s0 + $0xc0] sm:$0xff]  ;;  %v71_v4 = vld [vmem:[%s2044_s0 + $0xc8] sm:$0xff]  ;;  %v56_v5 = vld [vmem:[%s2044_s0 + $0x50] sm:$0xff] }
  0x23   :  { %v72_v6 = vld [vmem:[%s2044_s0 + $0xd0] sm:$0xff]  ;;  %v57_v7 = vld [vmem:[%s2044_s0 + $0x58] sm:$0xff]  ;;  %v58_v9 = vld [vmem:[%s2044_s0 + $0x60] sm:$0xff] }
  0x24   :  { %v73_v8 = vld [vmem:[%s2044_s0 + $0xd8] sm:$0xff]  ;;  %v74_v10 = vld [vmem:[%s2044_s0 + $0xe0] sm:$0xff]  ;;  %v59_v11 = vld [vmem:[%s2044_s0 + $0x68] sm:$0xff] }
  0x25   :  { %1245 = vmatpush3.bf16.xpose.msk.msra.mxu0 %vm1592_vm1, %v1243_v34  ;;  %1276 = vmatpush3.bf16.xpose.msk.msra.mxu1 %vm1592_vm1, %v1243_v34  ;;  %v75_v12 = vld [vmem:[%s2044_s0 + $0xe8] sm:$0xff]  ;;  %v60_v13 = vld [vmem:[%s2044_s0 + $0x70] sm:$0xff]  ;;  %v61_v15 = vld [vmem:[%s2044_s0 + $0x78] sm:$0xff] }
  0x26   :  { %1248 = vmatprep.subr.msk.bf16.mxu0 %vm1592_vm1, %v1246_v35  ;;  %1269 = vmatprep.subr.msk.bf16.mxu1 %vm1592_vm1, %v1246_v35  ;;  %v76_v14 = vld [vmem:[%s2044_s0 + $0xf0] sm:$0xff] }
  0x2d   :  { %1251 = vmatpush3.bf16.xpose.msk.msra.mxu0 %vm1592_vm1, %v1249_v40  ;;  %1277 = vmatpush3.bf16.xpose.msk.msra.mxu1 %vm1592_vm1, %v1249_v40 }
  0x2e   :  { %1254 = vmatprep.subr.msk.bf16.mxu0 %vm1592_vm1, %v1252_v41  ;;  %1270 = vmatprep.subr.msk.bf16.mxu1 %vm1592_vm1, %v1252_v41 }
  0x35   :  { %1257 = vmatpush3.bf16.xpose.msk.msra.mxu0 %vm1592_vm1, %v1255_v46  ;;  %1278 = vmatpush3.bf16.xpose.msk.msra.mxu1 %vm1592_vm1, %v1255_v46 }
  0x36   :  { %1260 = vmatprep.subr.msk.bf16.mxu0 %vm1592_vm1, %v1258_v47  ;;  %1271 = vmatprep.subr.msk.bf16.mxu1 %vm1592_vm1, %v1258_v47 }
  0x3d   :  { %1263 = vmatpush3.bf16.xpose.msk.msra.mxu0 %vm1592_vm1, %v1261_v50  ;;  %1279 = vmatpush3.bf16.xpose.msk.msra.mxu1 %vm1592_vm1, %v1261_v50 }
  0x44   :  { %1153 = vmatmul.mubr.msk.f32.vlgmr.msra.gmra.mrb[0].mxu0 %vm78_vm0, %v1632_v16  ;;  %1185 = vmatmul.mubr.msk.f32.vlgmr.msra.gmra.mrb[0].mxu1 %vm78_vm0, %v1637_v17  ;;  %v77_v16 = vld [vmem:[%s2044_s0 + $0xf8] sm:$0xff]  ;;  %s1563_s0 = smov [#allocation2]  }
  0x45   :  { %1154 = vmatprep.mubr.msk.f32.mxu0 %vm78_vm0, %v47_v51  ;;  %1186 = vmatprep.mubr.msk.f32.mxu1 %vm78_vm0, %v63_v52  ;;  %s981_s23 = sshll.u32 %s1563_s0, 4  ;;  %s982_s23 = int_to_ptr.vmem [resolvable:$true] %s981_s23 }
  0x46   :  { %s1539_s24 = scalar_lea.vmem %s982_s23, 8192  ;;  %p1544_p1 = scmp.lt.s32.totalorder %s982_s23, %s982_s23 }
  0x47   :  { %p1540_p0 = scmp.ne.s32.totalorder %s982_s23, %s1539_s24  ;;  %p1545_p2 = scmp.lt.s32.totalorder %s1539_s24, %s1539_s24 }
  0x48   :  { %1155 = vmatmul.mubr.msk.f32.gmra.mrb[2].mxu0 %vm78_vm0, %v47_v51  ;;  %1187 = vmatmul.mubr.msk.f32.gmra.mrb[2].mxu1 %vm78_vm0, %v63_v52 }
  0x49   :  { %1156 = vmatprep.mubr.msk.f32.mxu0 %vm78_vm0, %v48_v53  ;;  %1188 = vmatprep.mubr.msk.f32.mxu1 %vm78_vm0, %v64_v54  ;;  %p1546_p3 = por %p1545_p2, %p1544_p1 }
  0x4b   :  { %p1547_p4 = pnand %p1546_p3, %p1540_p0 }
  0x4c   :  { %1157 = vmatmul.mubr.msk.f32.gmra.mrb[4].mxu0 %vm78_vm0, %v48_v53  ;;  %1189 = vmatmul.mubr.msk.f32.gmra.mrb[4].mxu1 %vm78_vm0, %v64_v54 }
  0x4d   :  { %1158 = vmatprep.mubr.msk.f32.mxu0 %vm78_vm0, %v49_v55  ;;  %1190 = vmatprep.mubr.msk.f32.mxu1 %vm78_vm0, %v65_v56 }
  0x50   :  { %1159 = vmatmul.mubr.msk.f32.gmra.mrb[6].mxu0 %vm78_vm0, %v49_v55  ;;  %1191 = vmatmul.mubr.msk.f32.gmra.mrb[6].mxu1 %vm78_vm0, %v65_v56 }
  0x51   :  { %1160 = vmatprep.mubr.msk.f32.mxu0 %vm78_vm0, %v50_v57  ;;  %1192 = vmatprep.mubr.msk.f32.mxu1 %vm78_vm0, %v66_v58 }
  0x54   :  { %1161 = vmatmul.mubr.msk.f32.gmra.mrb[8].mxu0 %vm78_vm0, %v50_v57  ;;  %1193 = vmatmul.mubr.msk.f32.gmra.mrb[8].mxu1 %vm78_vm0, %v66_v58 }
  0x55   :  { %1162 = vmatprep.mubr.msk.f32.mxu0 %vm78_vm0, %v51_v59  ;;  %1194 = vmatprep.mubr.msk.f32.mxu1 %vm78_vm0, %v67_v60 }
  0x58   :  { %1163 = vmatmul.mubr.msk.f32.gmra.mrb[10].mxu0 %vm78_vm0, %v51_v59  ;;  %1195 = vmatmul.mubr.msk.f32.gmra.mrb[10].mxu1 %vm78_vm0, %v67_v60 }
  0x59   :  { %1164 = vmatprep.mubr.msk.f32.mxu0 %vm78_vm0, %v52_v61  ;;  %1196 = vmatprep.mubr.msk.f32.mxu1 %vm78_vm0, %v68_v62 }
  0x5c   :  { %1165 = vmatmul.mubr.msk.f32.gmra.mrb[12].mxu0 %vm78_vm0, %v52_v61  ;;  %1197 = vmatmul.mubr.msk.f32.gmra.mrb[12].mxu1 %vm78_vm0, %v68_v62 }
  0x5d   :  { %1166 = vmatprep.mubr.msk.f32.mxu0 %vm78_vm0, %v53_v63  ;;  %1198 = vmatprep.mubr.msk.f32.mxu1 %vm78_vm0, %v69_v0 }
  0x60   :  { %1167 = vmatmul.mubr.msk.f32.gmra.mrb[14].mxu0 %vm78_vm0, %v53_v63  ;;  %1199 = vmatmul.mubr.msk.f32.gmra.mrb[14].mxu1 %vm78_vm0, %v69_v0 }
  0x61   :  { %1168 = vmatprep.mubr.msk.f32.mxu0 %vm78_vm0, %v54_v1  ;;  %1200 = vmatprep.mubr.msk.f32.mxu1 %vm78_vm0, %v70_v2 }
  0x64   :  { %1169 = vmatmul.mubr.msk.f32.gmra.mrb[16].mxu0 %vm78_vm0, %v54_v1  ;;  %1201 = vmatmul.mubr.msk.f32.gmra.mrb[16].mxu1 %vm78_vm0, %v70_v2 }
  0x65   :  { %1170 = vmatprep.mubr.msk.f32.mxu0 %vm78_vm0, %v55_v3  ;;  %1202 = vmatprep.mubr.msk.f32.mxu1 %vm78_vm0, %v71_v4 }
  0x68   :  { %1171 = vmatmul.mubr.msk.f32.gmra.mrb[18].mxu0 %vm78_vm0, %v55_v3  ;;  %1203 = vmatmul.mubr.msk.f32.gmra.mrb[18].mxu1 %vm78_vm0, %v71_v4 }
  0x69   :  { %1172 = vmatprep.mubr.msk.f32.mxu0 %vm78_vm0, %v56_v5  ;;  %1204 = vmatprep.mubr.msk.f32.mxu1 %vm78_vm0, %v72_v6 }
  0x6c   :  { %1173 = vmatmul.mubr.msk.f32.gmra.mrb[20].mxu0 %vm78_vm0, %v56_v5  ;;  %1205 = vmatmul.mubr.msk.f32.gmra.mrb[20].mxu1 %vm78_vm0, %v72_v6 }
  0x6d   :  { %1174 = vmatprep.mubr.msk.f32.mxu0 %vm78_vm0, %v57_v7  ;;  %1206 = vmatprep.mubr.msk.f32.mxu1 %vm78_vm0, %v73_v8 }
  0x70   :  { %1175 = vmatmul.mubr.msk.f32.gmra.mrb[22].mxu0 %vm78_vm0, %v57_v7  ;;  %1207 = vmatmul.mubr.msk.f32.gmra.mrb[22].mxu1 %vm78_vm0, %v73_v8 }
  0x71   :  { %1176 = vmatprep.mubr.msk.f32.mxu0 %vm78_vm0, %v58_v9  ;;  %1208 = vmatprep.mubr.msk.f32.mxu1 %vm78_vm0, %v74_v10 }
  0x74   :  { %1177 = vmatmul.mubr.msk.f32.gmra.mrb[24].mxu0 %vm78_vm0, %v58_v9  ;;  %1209 = vmatmul.mubr.msk.f32.gmra.mrb[24].mxu1 %vm78_vm0, %v74_v10 }
  0x75   :  { %1178 = vmatprep.mubr.msk.f32.mxu0 %vm78_vm0, %v59_v11  ;;  %1210 = vmatprep.mubr.msk.f32.mxu1 %vm78_vm0, %v75_v12 }
  0x78   :  { %1179 = vmatmul.mubr.msk.f32.gmra.mrb[26].mxu0 %vm78_vm0, %v59_v11  ;;  %1211 = vmatmul.mubr.msk.f32.gmra.mrb[26].mxu1 %vm78_vm0, %v75_v12 }
  0x79   :  { %1180 = vmatprep.mubr.msk.f32.mxu0 %vm78_vm0, %v60_v13  ;;  %1212 = vmatprep.mubr.msk.f32.mxu1 %vm78_vm0, %v76_v14 }
  0x7c   :  { %1181 = vmatmul.mubr.msk.f32.gmra.mrb[28].mxu0 %vm78_vm0, %v60_v13  ;;  %1213 = vmatmul.mubr.msk.f32.gmra.mrb[28].mxu1 %vm78_vm0, %v76_v14 }
  0x7d   :  { %1182 = vmatprep.mubr.msk.f32.mxu0 %vm78_vm0, %v61_v15  ;;  %1214 = vmatprep.mubr.msk.f32.mxu1 %vm78_vm0, %v77_v16 }
  0x80   :  { %1183 = vmatmul.mubr.msk.f32.gmra.mrb[30].mxu0 %vm78_vm0, %v61_v15  ;;  %1215 = vmatmul.mubr.msk.f32.gmra.mrb[30].mxu1 %vm78_vm0, %v77_v16 }
 0x117   :  { %v337_v17 = vpop.f32.mrb[0].mxu0  ;;  %v433_v18 = vpop.f32.mrb[0].mxu1 }
 0x118   :  { %v1056_v19 = vmul.f32 -1.442695, %v337_v17  ;;  %v1088_v20 = vmul.f32 -1.442695, %v433_v18  ;;  %v339_v21 = vpop.f32.mrb[1].mxu0  ;;  %v435_v22 = vpop.f32.mrb[1].mxu1 }
 0x119   :  { %v1057_v23 = vmul.f32 -1.442695, %v339_v21  ;;  %v1089_v24 = vmul.f32 -1.442695, %v435_v22 }
 0x11a   :  { %1283 = vpow2.f32 %v1056_v19 }
 0x11b   :  { %1285 = vpow2.f32 %v1088_v20  ;;  %v343_v25 = vpop.f32.mrb[2].mxu0  ;;  %v439_v26 = vpop.f32.mrb[2].mxu1 }
 0x11c   :  { %1287 = vpow2.f32 %v1057_v23  ;;  %v1058_v27 = vmul.f32 -1.442695, %v343_v25  ;;  %v1090_v28 = vmul.f32 -1.442695, %v439_v26  ;;  %v345_v29 = vpop.f32.mrb[3].mxu0  ;;  %v441_v30 = vpop.f32.mrb[3].mxu1 }
 0x11d   :  { %1289 = vpow2.f32 %v1089_v24  ;;  %v1059_v31 = vmul.f32 -1.442695, %v345_v29  ;;  %v1091_v32 = vmul.f32 -1.442695, %v441_v30 }
 0x11e   :  { %1291 = vpow2.f32 %v1058_v27 }
 0x11f   :  { %1293 = vpow2.f32 %v1090_v28  ;;  %v349_v33 = vpop.f32.mrb[4].mxu0  ;;  %v445_v34 = vpop.f32.mrb[4].mxu1 }
 0x120   :  { %1295 = vpow2.f32 %v1059_v31  ;;  %v1060_v35 = vmul.f32 -1.442695, %v349_v33  ;;  %v1092_v36 = vmul.f32 -1.442695, %v445_v34  ;;  %v351_v37 = vpop.f32.mrb[5].mxu0  ;;  %v447_v38 = vpop.f32.mrb[5].mxu1 }
 0x121   :  { %1297 = vpow2.f32 %v1091_v32  ;;  %v1061_v39 = vmul.f32 -1.442695, %v351_v37  ;;  %v1093_v40 = vmul.f32 -1.442695, %v447_v38 }
 0x122   :  { %1299 = vpow2.f32 %v1060_v35 }
 0x123   :  { %1301 = vpow2.f32 %v1092_v36  ;;  %v355_v41 = vpop.f32.mrb[6].mxu0  ;;  %v451_v42 = vpop.f32.mrb[6].mxu1 }
 0x124   :  { %v1284_v43 = vpop.eup %1283  ;;  %1303 = vpow2.f32 %v1061_v39  ;;  %v1062_v44 = vmul.f32 -1.442695, %v355_v41  ;;  %v357_v45 = vpop.f32.mrb[7].mxu0  ;;  %v1094_v17 = vmul.f32 -1.442695, %v451_v42 }
 0x125   :  { %v453_v46 = vpop.f32.mrb[7].mxu1  ;;  %v1286_v47 = vpop.eup %1285  ;;  %v720_v48 = vadd.f32 1.0, %v1284_v43  ;;  %1305 = vpow2.f32 %v1093_v40  ;;  %v1063_v21 = vmul.f32 -1.442695, %v357_v45 }
 0x126   :  { %v1288_v49 = vpop.eup %1287  ;;  %v752_v50 = vadd.f32 1.0, %v1286_v47  ;;  %1307 = vpow2.f32 %v1062_v44  ;;  %v1095_v24 = vmul.f32 -1.442695, %v453_v46 }
 0x127   :  { %v1290_v51 = vpop.eup %1289  ;;  %1309 = vrcp.f32 %v720_v48  ;;  %v721_v52 = vadd.f32 1.0, %v1288_v49  ;;  %v361_v53 = vpop.f32.mrb[8].mxu0 }
 0x128   :  { %v457_v54 = vpop.f32.mrb[8].mxu1  ;;  %v1292_v55 = vpop.eup %1291  ;;  %1311 = vrcp.f32 %v752_v50  ;;  %v753_v56 = vadd.f32 1.0, %v1290_v51  ;;  %v1064_v26 = vmul.f32 -1.442695, %v361_v53 }
 0x129   :  { %v363_v57 = vpop.f32.mrb[9].mxu0  ;;  %v1294_v58 = vpop.eup %1293  ;;  %1313 = vrcp.f32 %v721_v52  ;;  %v722_v59 = vadd.f32 1.0, %v1292_v55  ;;  %v1096_v30 = vmul.f32 -1.442695, %v457_v54 }
 0x12a   :  { %v459_v60 = vpop.f32.mrb[9].mxu1  ;;  %v1296_v61 = vpop.eup %1295  ;;  %1315 = vrcp.f32 %v753_v56  ;;  %v754_v62 = vadd.f32 1.0, %v1294_v58  ;;  %v1065_v34 = vmul.f32 -1.442695, %v363_v57 }
 0x12b   :  { %v1298_v63 = vpop.eup %1297  ;;  %1317 = vrcp.f32 %v722_v59  ;;  %v723_v0 = vadd.f32 1.0, %v1296_v61  ;;  %v367_v1 = vpop.f32.mrb[10].mxu0  ;;  %v1097_v36 = vmul.f32 -1.442695, %v459_v60 }
 0x12c   :  { %v463_v2 = vpop.f32.mrb[10].mxu1  ;;  %v1300_v3 = vpop.eup %1299  ;;  %1319 = vrcp.f32 %v754_v62  ;;  %v755_v4 = vadd.f32 1.0, %v1298_v63  ;;  %v1066_v38 = vmul.f32 -1.442695, %v367_v1 }
 0x12d   :  { %v369_v5 = vpop.f32.mrb[11].mxu0  ;;  %v1302_v6 = vpop.eup %1301  ;;  %1321 = vrcp.f32 %v723_v0  ;;  %v724_v7 = vadd.f32 1.0, %v1300_v3  ;;  %v1098_v42 = vmul.f32 -1.442695, %v463_v2 }
 0x12e   :  { %v465_v8 = vpop.f32.mrb[11].mxu1  ;;  %v1304_v9 = vpop.eup %1303  ;;  %1323 = vrcp.f32 %v755_v4  ;;  %v756_v10 = vadd.f32 1.0, %v1302_v6  ;;  %v1067_v46 = vmul.f32 -1.442695, %v369_v5 }
 0x12f   :  { %v1306_v11 = vpop.eup %1305  ;;  %1325 = vrcp.f32 %v724_v7  ;;  %v725_v12 = vadd.f32 1.0, %v1304_v9  ;;  %v373_v13 = vpop.f32.mrb[12].mxu0  ;;  %v1099_v48 = vmul.f32 -1.442695, %v465_v8 }
 0x130   :  { %v1915_v14 = vpop.f32.mrb[12].mxu1  ;;  %v1308_v15 = vpop.eup %1307  ;;  %1327 = vrcp.f32 %v756_v10  ;;  %v757_v16 = vadd.f32 1.0, %v1306_v11  ;;  %v1068_v50 = vmul.f32 -1.442695, %v373_v13 }
 0x131   :  { %v1917_v18 = vpop.f32.mrb[13].mxu0  ;;  %v1310_v19 = vpop.eup %1309  ;;  %1329 = vrcp.f32 %v725_v12  ;;  %v726_v20 = vadd.f32 1.0, %v1308_v15  ;;  %v1100_v54 = vmul.f32 -1.442695, %v1915_v14 }
 0x132   :  { %v1919_v22 = vpop.f32.mrb[13].mxu1  ;;  %v1312_v23 = vpop.eup %1311  ;;  %912 = vst [vmem:[#allocation2] sm:$0xff] %v1310_v19  ;;  %1331 = vrcp.f32 %v757_v16 }
 0x133   :  { %v1314_v25 = vpop.eup %1313  ;;  %944 = vst [vmem:[#allocation2 + $0x100] sm:$0xff] %v1312_v23  ;;  %1333 = vrcp.f32 %v726_v20  ;;  %v1921_v27 = vpop.f32.mrb[14].mxu0 }
 0x134   :  { %v1923_v28 = vpop.f32.mrb[14].mxu1  ;;  %v1316_v29 = vpop.eup %1315  ;;  %913 = vst [vmem:[#allocation2 + $0x8] sm:$0xff] %v1314_v25  ;;  %1335 = vpow2.f32 %v1094_v17 }
 0x135   :  { %v1925_v31 = vpop.f32.mrb[15].mxu0  ;;  %v1927_v32 = vpop.f32.mrb[15].mxu1  ;;  %945 = vst [vmem:[#allocation2 + $0x108] sm:$0xff] %v1316_v29  ;;  %1337 = vpow2.f32 %v1063_v21 }
 0x136   :  { %v1318_v33 = vpop.eup %1317  ;;  %1339 = vpow2.f32 %v1095_v24 }
 0x137   :  { %v1320_v35 = vpop.eup %1319  ;;  %914 = vst [vmem:[#allocation2 + $0x10] sm:$0xff] %v1318_v33  ;;  %1341 = vpow2.f32 %v1064_v26  ;;  %v1929_v39 = vpop.f32.mrb[16].mxu0 }
 0x138   :  { %v1322_v37 = vpop.eup %1321  ;;  %946 = vst [vmem:[#allocation2 + $0x110] sm:$0xff] %v1320_v35  ;;  %v1931_v40 = vpop.f32.mrb[16].mxu1  ;;  %1343 = vpow2.f32 %v1096_v30 }
 0x139   :  { %v1324_v41 = vpop.eup %1323  ;;  %915 = vst [vmem:[#allocation2 + $0x18] sm:$0xff] %v1322_v37  ;;  %v1933_v43 = vpop.f32.mrb[17].mxu0  ;;  %1345 = vpow2.f32 %v1065_v34  ;;  %v1069_v37 = vmul.f32 -1.442695, %v1917_v18  ;;  %v1102_v18 = vmul.f32 -1.442695, %v1923_v28 }
 0x13a   :  { %v1935_v44 = vpop.f32.mrb[17].mxu1  ;;  %v1326_v45 = vpop.eup %1325  ;;  %947 = vst [vmem:[#allocation2 + $0x118] sm:$0xff] %v1324_v41  ;;  %1347 = vpow2.f32 %v1097_v36 }
 0x13b   :  { %v1328_v47 = vpop.eup %1327  ;;  %916 = vst [vmem:[#allocation2 + $0x20] sm:$0xff] %v1326_v45  ;;  %1349 = vpow2.f32 %v1066_v38  ;;  %v1937_v51 = vpop.f32.mrb[18].mxu0 }
 0x13c   :  { %v1330_v49 = vpop.eup %1329  ;;  %948 = vst [vmem:[#allocation2 + $0x120] sm:$0xff] %v1328_v47  ;;  %v1939_v52 = vpop.f32.mrb[18].mxu1  ;;  %1351 = vpow2.f32 %v1098_v42  ;;  %v1101_v42 = vmul.f32 -1.442695, %v1919_v22  ;;  %v1071_v22 = vmul.f32 -1.442695, %v1925_v31 }
 0x13d   :  { %v1332_v53 = vpop.eup %1331  ;;  %917 = vst [vmem:[#allocation2 + $0x28] sm:$0xff] %v1330_v49  ;;  %v1942_v55 = vpop.f32.mrb[19].mxu0  ;;  %1353 = vpow2.f32 %v1067_v46  ;;  %v1104_v31 = vmul.f32 -1.442695, %v1931_v40 }
 0x13e   :  { %v1944_v56 = vpop.f32.mrb[19].mxu1  ;;  %v1334_v57 = vpop.eup %1333  ;;  %949 = vst [vmem:[#allocation2 + $0x128] sm:$0xff] %v1332_v53  ;;  %1355 = vpow2.f32 %v1099_v48  ;;  %v1070_v48 = vmul.f32 -1.442695, %v1921_v27 }
 0x13f   :  { %v1336_v58 = vpop.eup %1335  ;;  %918 = vst [vmem:[#allocation2 + $0x30] sm:$0xff] %v1334_v57  ;;  %1357 = vpow2.f32 %v1068_v50  ;;  %v1946_v61 = vpop.f32.mrb[20].mxu0 }
 0x140   :  { %v1338_v59 = vpop.eup %1337  ;;  %v758_v60 = vadd.f32 1.0, %v1336_v58  ;;  %v1948_v62 = vpop.f32.mrb[20].mxu1  ;;  %1359 = vpow2.f32 %v1100_v54  ;;  %v1103_v58 = vmul.f32 -1.442695, %v1927_v32  ;;  %v1073_v32 = vmul.f32 -1.442695, %v1933_v43 }
 0x141   :  { %v1340_v63 = vpop.eup %1339  ;;  %v727_v0 = vadd.f32 1.0, %v1338_v59  ;;  %v1950_v1 = vpop.f32.mrb[21].mxu0  ;;  %v1106_v43 = vmul.f32 -1.442695, %v1939_v52 }
 0x142   :  { %v1342_v2 = vpop.eup %1341  ;;  %1361 = vrcp.f32 %v758_v60  ;;  %v759_v3 = vadd.f32 1.0, %v1340_v63  ;;  %v1952_v4 = vpop.f32.mrb[21].mxu1  ;;  %v1072_v63 = vmul.f32 -1.442695, %v1929_v39 }
 0x143   :  { %v1344_v5 = vpop.eup %1343  ;;  %1363 = vrcp.f32 %v727_v0  ;;  %v728_v6 = vadd.f32 1.0, %v1342_v2  ;;  %v1954_v9 = vpop.f32.mrb[22].mxu0 }
 0x144   :  { %v1346_v7 = vpop.eup %1345  ;;  %1365 = vrcp.f32 %v759_v3  ;;  %v760_v8 = vadd.f32 1.0, %v1344_v5  ;;  %v1956_v10 = vpop.f32.mrb[22].mxu1 }
 0x145   :  { %v1348_v11 = vpop.eup %1347  ;;  %1367 = vrcp.f32 %v728_v6  ;;  %v729_v12 = vadd.f32 1.0, %v1346_v7  ;;  %v1958_v13 = vpop.f32.mrb[23].mxu0  ;;  %v1105_v6 = vmul.f32 -1.442695, %v1935_v44  ;;  %v1075_v44 = vmul.f32 -1.442695, %v1942_v55 }
 0x146   :  { %v1350_v14 = vpop.eup %1349  ;;  %1369 = vrcp.f32 %v760_v8  ;;  %v761_v15 = vadd.f32 1.0, %v1348_v11  ;;  %v1960_v16 = vpop.f32.mrb[23].mxu1  ;;  %v1074_v11 = vmul.f32 -1.442695, %v1937_v51 }
 0x147   :  { %v1352_v17 = vpop.eup %1351  ;;  %1371 = vrcp.f32 %v729_v12  ;;  %v730_v19 = vadd.f32 1.0, %v1350_v14  ;;  %v1962_v23 = vpop.f32.mrb[24].mxu0 }
 0x148   :  { %v1354_v20 = vpop.eup %1353  ;;  %1373 = vrcp.f32 %v761_v15  ;;  %v762_v21 = vadd.f32 1.0, %v1352_v17  ;;  %v1964_v24 = vpop.f32.mrb[24].mxu1 }
 0x149   :  { %v1356_v25 = vpop.eup %1355  ;;  %1375 = vrcp.f32 %v730_v19  ;;  %v731_v26 = vadd.f32 1.0, %v1354_v20  ;;  %v1966_v29 = vpop.f32.mrb[25].mxu0 }
 0x14a   :  { %v1358_v30 = vpop.eup %1357  ;;  %1377 = vrcp.f32 %v762_v21  ;;  %v763_v33 = vadd.f32 1.0, %v1356_v25  ;;  %v1968_v34 = vpop.f32.mrb[25].mxu1 }
 0x14b   :  { %v1360_v35 = vpop.eup %1359  ;;  %1379 = vrcp.f32 %v731_v26  ;;  %v732_v36 = vadd.f32 1.0, %v1358_v30  ;;  %v1972_v45 = vpop.f32.mrb[26].mxu0 }
 0x14c   :  { %v1362_v38 = vpop.eup %1361  ;;  %1381 = vrcp.f32 %v763_v33  ;;  %v764_v41 = vadd.f32 1.0, %v1360_v35  ;;  %v1974_v46 = vpop.f32.mrb[26].mxu1 }
 0x14d   :  { %v1364_v47 = vpop.eup %1363  ;;  %950 = vst [vmem:[#allocation2 + $0x130] sm:$0xff] %v1362_v38  ;;  %1383 = vrcp.f32 %v732_v36  ;;  %v1977_v49 = vpop.f32.mrb[27].mxu0 }
 0x14e   :  { %v1979_v50 = vpop.f32.mrb[27].mxu1  ;;  %v1366_v53 = vpop.eup %1365  ;;  %919 = vst [vmem:[#allocation2 + $0x38] sm:$0xff] %v1364_v47  ;;  %1385 = vrcp.f32 %v764_v41 }
 0x14f   :  { %v1368_v54 = vpop.eup %1367  ;;  %951 = vst [vmem:[#allocation2 + $0x138] sm:$0xff] %v1366_v53  ;;  %1387 = vpow2.f32 %v1069_v37  ;;  %v1984_v27 = vpop.f32.mrb[28].mxu0 }
 0x150   :  { %v1370_v57 = vpop.eup %1369  ;;  %920 = vst [vmem:[#allocation2 + $0x40] sm:$0xff] %v1368_v54  ;;  %1389 = vpow2.f32 %v1101_v42  ;;  %v1986_v59 = vpop.f32.mrb[28].mxu1 }
 0x151   :  { %v1372_v60 = vpop.eup %1371  ;;  %952 = vst [vmem:[#allocation2 + $0x140] sm:$0xff] %v1370_v57  ;;  %1391 = vpow2.f32 %v1070_v48  ;;  %v1989_v28 = vpop.f32.mrb[29].mxu0 }
 0x152   :  { %v1991_v0 = vpop.f32.mrb[29].mxu1  ;;  %v1374_v2 = vpop.eup %1373  ;;  %921 = vst [vmem:[#allocation2 + $0x48] sm:$0xff] %v1372_v60  ;;  %1393 = vpow2.f32 %v1102_v18 }
 0x153   :  { %v1376_v3 = vpop.eup %1375  ;;  %953 = vst [vmem:[#allocation2 + $0x148] sm:$0xff] %v1374_v2  ;;  %1395 = vpow2.f32 %v1071_v22  ;;  %v1996_v39 = vpop.f32.mrb[30].mxu0 }
 0x154   :  { %v1378_v5 = vpop.eup %1377  ;;  %922 = vst [vmem:[#allocation2 + $0x50] sm:$0xff] %v1376_v3  ;;  %1397 = vpow2.f32 %v1103_v58  ;;  %v1998_v7 = vpop.f32.mrb[30].mxu1  ;;  %v1076_v3 = vmul.f32 -1.442695, %v1946_v61  ;;  %v1078_v61 = vmul.f32 -1.442695, %v1954_v9 }
 0x155   :  { %v1380_v8 = vpop.eup %1379  ;;  %954 = vst [vmem:[#allocation2 + $0x150] sm:$0xff] %v1378_v5  ;;  %1399 = vpow2.f32 %v1072_v63  ;;  %v2001_v40 = vpop.f32.mrb[31].mxu0  ;;  %v1107_v63 = vmul.f32 -1.442695, %v1944_v56  ;;  %v1108_v5 = vmul.f32 -1.442695, %v1948_v62 }
 0x156   :  { %v2003_v12 = vpop.f32.mrb[31].mxu1  ;;  %v1382_v14 = vpop.eup %1381  ;;  %923 = vst [vmem:[#allocation2 + $0x58] sm:$0xff] %v1380_v8  ;;  %1401 = vpow2.f32 %v1104_v31  ;;  %v1077_v8 = vmul.f32 -1.442695, %v1950_v1  ;;  %v1109_v56 = vmul.f32 -1.442695, %v1952_v4 }
 0x157   :  { %v1384_v15 = vpop.eup %1383  ;;  %955 = vst [vmem:[#allocation2 + $0x158] sm:$0xff] %v1382_v14  ;;  %1403 = vpow2.f32 %v1073_v32  ;;  %v1110_v62 = vmul.f32 -1.442695, %v1956_v10  ;;  %v1079_v1 = vmul.f32 -1.442695, %v1958_v13 }
 0x158   :  { %v1386_v17 = vpop.eup %1385  ;;  %924 = vst [vmem:[#allocation2 + $0x60] sm:$0xff] %v1384_v15  ;;  %1405 = vpow2.f32 %v1105_v6  ;;  %v1111_v4 = vmul.f32 -1.442695, %v1960_v16  ;;  %v1080_v9 = vmul.f32 -1.442695, %v1962_v23 }
 0x159   :  { %v1388_v19 = vpop.eup %1387  ;;  %956 = vst [vmem:[#allocation2 + $0x160] sm:$0xff] %v1386_v17  ;;  %1407 = vpow2.f32 %v1074_v11  ;;  %v1112_v10 = vmul.f32 -1.442695, %v1964_v24  ;;  %v1081_v13 = vmul.f32 -1.442695, %v1966_v29 }
 0x15a   :  { %v1390_v51 = vpop.eup %1389  ;;  %v733_v20 = vadd.f32 1.0, %v1388_v19  ;;  %1409 = vpow2.f32 %v1106_v43  ;;  %v1113_v16 = vmul.f32 -1.442695, %v1968_v34 }
 0x15b   :  { %v1392_v21 = vpop.eup %1391  ;;  %v765_v25 = vadd.f32 1.0, %v1390_v51  ;;  %1411 = vpow2.f32 %v1075_v44 }
 0x15c   :  { %v1394_v26 = vpop.eup %1393  ;;  %1413 = vrcp.f32 %v733_v20  ;;  %v734_v52 = vadd.f32 1.0, %v1392_v21 }
 0x15d   :  { %v1396_v30 = vpop.eup %1395  ;;  %1415 = vrcp.f32 %v765_v25  ;;  %v766_v33 = vadd.f32 1.0, %v1394_v26 }
 0x15e   :  { %v1398_v35 = vpop.eup %1397  ;;  %1417 = vrcp.f32 %v734_v52  ;;  %v735_v55 = vadd.f32 1.0, %v1396_v30 }
 0x15f   :  { %v1400_v36 = vpop.eup %1399  ;;  %1419 = vrcp.f32 %v766_v33  ;;  %v767_v37 = vadd.f32 1.0, %v1398_v35 }
 0x160   :  { %v1402_v38 = vpop.eup %1401  ;;  %1421 = vrcp.f32 %v735_v55  ;;  %v736_v41 = vadd.f32 1.0, %v1400_v36 }
 0x161   :  { %v1404_v42 = vpop.eup %1403  ;;  %1423 = vrcp.f32 %v767_v37  ;;  %v768_v47 = vadd.f32 1.0, %v1402_v38 }
 0x162   :  { %v1406_v48 = vpop.eup %1405  ;;  %1425 = vrcp.f32 %v736_v41  ;;  %v737_v53 = vadd.f32 1.0, %v1404_v42 }
 0x163   :  { %v1408_v18 = vpop.eup %1407  ;;  %1427 = vrcp.f32 %v768_v47  ;;  %v769_v54 = vadd.f32 1.0, %v1406_v48 }
 0x164   :  { %v1410_v22 = vpop.eup %1409  ;;  %1429 = vrcp.f32 %v737_v53  ;;  %v738_v57 = vadd.f32 1.0, %v1408_v18 }
 0x165   :  { %v1412_v58 = vpop.eup %1411  ;;  %1431 = vrcp.f32 %v769_v54  ;;  %v770_v60 = vadd.f32 1.0, %v1410_v22 }
 0x166   :  { %v1414_v2 = vpop.eup %1413  ;;  %1433 = vrcp.f32 %v738_v57  ;;  %v739_v31 = vadd.f32 1.0, %v1412_v58 }
 0x167   :  { %v1416_v32 = vpop.eup %1415  ;;  %925 = vst [vmem:[#allocation2 + $0x68] sm:$0xff] %v1414_v2  ;;  %1435 = vrcp.f32 %v770_v60 }
 0x168   :  { %v1418_v6 = vpop.eup %1417  ;;  %957 = vst [vmem:[#allocation2 + $0x168] sm:$0xff] %v1416_v32  ;;  %1437 = vrcp.f32 %v739_v31 }
 0x169   :  { %v1420_v11 = vpop.eup %1419  ;;  %926 = vst [vmem:[#allocation2 + $0x70] sm:$0xff] %v1418_v6  ;;  %1439 = vpow2.f32 %v1107_v63  ;;  %v1082_v63 = vmul.f32 -1.442695, %v1972_v45  ;;  %v1084_v45 = vmul.f32 -1.442695, %v1984_v27 }
 0x16a   :  { %v1422_v14 = vpop.eup %1421  ;;  %958 = vst [vmem:[#allocation2 + $0x170] sm:$0xff] %v1420_v11  ;;  %1441 = vpow2.f32 %v1076_v3  ;;  %v1114_v3 = vmul.f32 -1.442695, %v1974_v46  ;;  %v1116_v46 = vmul.f32 -1.442695, %v1986_v59 }
 0x16b   :  { %v1424_v43 = vpop.eup %1423  ;;  %927 = vst [vmem:[#allocation2 + $0x78] sm:$0xff] %v1422_v14  ;;  %1443 = vpow2.f32 %v1108_v5  ;;  %v1083_v5 = vmul.f32 -1.442695, %v1977_v49  ;;  %v1085_v49 = vmul.f32 -1.442695, %v1989_v28 }
 0x16c   :  { %v1426_v15 = vpop.eup %1425  ;;  %959 = vst [vmem:[#allocation2 + $0x178] sm:$0xff] %v1424_v43  ;;  %1445 = vpow2.f32 %v1077_v8  ;;  %v1115_v8 = vmul.f32 -1.442695, %v1979_v50  ;;  %v1117_v50 = vmul.f32 -1.442695, %v1991_v0 }
 0x16d   :  { %v1428_v44 = vpop.eup %1427  ;;  %928 = vst [vmem:[#allocation2 + $0x80] sm:$0xff] %v1426_v15  ;;  %1447 = vpow2.f32 %v1109_v56  ;;  %v1086_v27 = vmul.f32 -1.442695, %v1996_v39  ;;  %v1118_v59 = vmul.f32 -1.442695, %v1998_v7 }
 0x16e   :  { %v1430_v17 = vpop.eup %1429  ;;  %960 = vst [vmem:[#allocation2 + $0x180] sm:$0xff] %v1428_v44  ;;  %1449 = vpow2.f32 %v1078_v61  ;;  %v1087_v28 = vmul.f32 -1.442695, %v2001_v40  ;;  %v1119_v0 = vmul.f32 -1.442695, %v2003_v12 }
 0x16f   :  { %v1432_v19 = vpop.eup %1431  ;;  %929 = vst [vmem:[#allocation2 + $0x88] sm:$0xff] %v1430_v17  ;;  %1451 = vpow2.f32 %v1110_v62 }
 0x170   :  { %v1434_v51 = vpop.eup %1433  ;;  %961 = vst [vmem:[#allocation2 + $0x188] sm:$0xff] %v1432_v19  ;;  %1453 = vpow2.f32 %v1079_v1 }
 0x171   :  { %v1436_v20 = vpop.eup %1435  ;;  %930 = vst [vmem:[#allocation2 + $0x90] sm:$0xff] %v1434_v51  ;;  %1455 = vpow2.f32 %v1111_v4 }
 0x172   :  { %v1438_v21 = vpop.eup %1437  ;;  %962 = vst [vmem:[#allocation2 + $0x190] sm:$0xff] %v1436_v20  ;;  %1457 = vpow2.f32 %v1080_v9 }
 0x173   :  { %v1440_v25 = vpop.eup %1439  ;;  %931 = vst [vmem:[#allocation2 + $0x98] sm:$0xff] %v1438_v21  ;;  %1459 = vpow2.f32 %v1112_v10 }
 0x174   :  { %v1442_v23 = vpop.eup %1441  ;;  %v771_v26 = vadd.f32 1.0, %v1440_v25  ;;  %1461 = vpow2.f32 %v1081_v13 }
 0x175   :  { %v1444_v24 = vpop.eup %1443  ;;  %v740_v52 = vadd.f32 1.0, %v1442_v23  ;;  %1463 = vpow2.f32 %v1113_v16 }
 0x176   :  { %v1446_v30 = vpop.eup %1445  ;;  %1465 = vrcp.f32 %v771_v26  ;;  %v772_v29 = vadd.f32 1.0, %v1444_v24 }
 0x177   :  { %v1448_v33 = vpop.eup %1447  ;;  %1467 = vrcp.f32 %v740_v52  ;;  %v741_v35 = vadd.f32 1.0, %v1446_v30 }
 0x178   :  { %v1450_v55 = vpop.eup %1449  ;;  %1469 = vrcp.f32 %v772_v29  ;;  %v773_v34 = vadd.f32 1.0, %v1448_v33 }
 0x179   :  { %v1452_v36 = vpop.eup %1451  ;;  %1471 = vrcp.f32 %v741_v35  ;;  %v742_v37 = vadd.f32 1.0, %v1450_v55 }
 0x17a   :  { %v1454_v38 = vpop.eup %1453  ;;  %1473 = vrcp.f32 %v773_v34  ;;  %v774_v41 = vadd.f32 1.0, %v1452_v36 }
 0x17b   :  { %v1456_v42 = vpop.eup %1455  ;;  %1475 = vrcp.f32 %v742_v37  ;;  %v743_v47 = vadd.f32 1.0, %v1454_v38 }
 0x17c   :  { %v1458_v48 = vpop.eup %1457  ;;  %1477 = vrcp.f32 %v774_v41  ;;  %v775_v53 = vadd.f32 1.0, %v1456_v42 }
 0x17d   :  { %v1460_v18 = vpop.eup %1459  ;;  %1479 = vrcp.f32 %v743_v47  ;;  %v744_v54 = vadd.f32 1.0, %v1458_v48 }
 0x17e   :  { %v1462_v22 = vpop.eup %1461  ;;  %1481 = vrcp.f32 %v775_v53  ;;  %v776_v57 = vadd.f32 1.0, %v1460_v18 }
 0x17f   :  { %v1464_v58 = vpop.eup %1463  ;;  %1483 = vrcp.f32 %v744_v54  ;;  %v745_v60 = vadd.f32 1.0, %v1462_v22 }
 0x180   :  { %v1466_v2 = vpop.eup %1465  ;;  %1485 = vrcp.f32 %v776_v57  ;;  %v777_v31 = vadd.f32 1.0, %v1464_v58 }
 0x181   :  { %v1468_v32 = vpop.eup %1467  ;;  %963 = vst [vmem:[#allocation2 + $0x198] sm:$0xff] %v1466_v2  ;;  %1487 = vrcp.f32 %v745_v60 }
 0x182   :  { %v1470_v6 = vpop.eup %1469  ;;  %932 = vst [vmem:[#allocation2 + $0xa0] sm:$0xff] %v1468_v32  ;;  %1489 = vrcp.f32 %v777_v31 }
 0x183   :  { %v1472_v11 = vpop.eup %1471  ;;  %964 = vst [vmem:[#allocation2 + $0x1a0] sm:$0xff] %v1470_v6  ;;  %1491 = vpow2.f32 %v1082_v63 }
 0x184   :  { %v1474_v56 = vpop.eup %1473  ;;  %933 = vst [vmem:[#allocation2 + $0xa8] sm:$0xff] %v1472_v11  ;;  %1493 = vpow2.f32 %v1114_v3 }
 0x185   :  { %v1476_v14 = vpop.eup %1475  ;;  %965 = vst [vmem:[#allocation2 + $0x1a8] sm:$0xff] %v1474_v56  ;;  %1495 = vpow2.f32 %v1083_v5 }
 0x186   :  { %v1478_v61 = vpop.eup %1477  ;;  %934 = vst [vmem:[#allocation2 + $0xb0] sm:$0xff] %v1476_v14  ;;  %1497 = vpow2.f32 %v1115_v8 }
 0x187   :  { %v1480_v43 = vpop.eup %1479  ;;  %966 = vst [vmem:[#allocation2 + $0x1b0] sm:$0xff] %v1478_v61  ;;  %1499 = vpow2.f32 %v1084_v45 }
 0x188   :  { %v1482_v62 = vpop.eup %1481  ;;  %935 = vst [vmem:[#allocation2 + $0xb8] sm:$0xff] %v1480_v43  ;;  %1501 = vpow2.f32 %v1116_v46 }
 0x189   :  { %v1484_v15 = vpop.eup %1483  ;;  %967 = vst [vmem:[#allocation2 + $0x1b8] sm:$0xff] %v1482_v62  ;;  %1503 = vpow2.f32 %v1085_v49 }
 0x18a   :  { %v1486_v1 = vpop.eup %1485  ;;  %936 = vst [vmem:[#allocation2 + $0xc0] sm:$0xff] %v1484_v15  ;;  %1505 = vpow2.f32 %v1117_v50 }
 0x18b   :  { %v1488_v44 = vpop.eup %1487  ;;  %968 = vst [vmem:[#allocation2 + $0x1c0] sm:$0xff] %v1486_v1  ;;  %1507 = vpow2.f32 %v1086_v27 }
 0x18c   :  { %v1490_v4 = vpop.eup %1489  ;;  %937 = vst [vmem:[#allocation2 + $0xc8] sm:$0xff] %v1488_v44  ;;  %1509 = vpow2.f32 %v1118_v59 }
 0x18d   :  { %v1492_v39 = vpop.eup %1491  ;;  %969 = vst [vmem:[#allocation2 + $0x1c8] sm:$0xff] %v1490_v4  ;;  %1511 = vpow2.f32 %v1087_v28 }
 0x18e   :  { %v1494_v7 = vpop.eup %1493  ;;  %v746_v17 = vadd.f32 1.0, %v1492_v39  ;;  %1513 = vpow2.f32 %v1119_v0 }
 0x18f   :  { %v1496_v9 = vpop.eup %1495  ;;  %v778_v19 = vadd.f32 1.0, %v1494_v7 }
 0x190   :  { %v1498_v40 = vpop.eup %1497  ;;  %1515 = vrcp.f32 %v746_v17  ;;  %v747_v10 = vadd.f32 1.0, %v1496_v9 }
 0x191   :  { %v1500_v51 = vpop.eup %1499  ;;  %1517 = vrcp.f32 %v778_v19  ;;  %v779_v12 = vadd.f32 1.0, %v1498_v40 }
 0x192   :  { %v1502_v13 = vpop.eup %1501  ;;  %1519 = vrcp.f32 %v747_v10  ;;  %v748_v20 = vadd.f32 1.0, %v1500_v51 }
 0x193   :  { %v1504_v16 = vpop.eup %1503  ;;  %1521 = vrcp.f32 %v779_v12  ;;  %v780_v21 = vadd.f32 1.0, %v1502_v13 }
 0x194   :  { %v1506_v25 = vpop.eup %1505  ;;  %1523 = vrcp.f32 %v748_v20  ;;  %v749_v23 = vadd.f32 1.0, %v1504_v16 }
 0x195   :  { %v1508_v26 = vpop.eup %1507  ;;  %1525 = vrcp.f32 %v780_v21  ;;  %v781_v24 = vadd.f32 1.0, %v1506_v25 }
 0x196   :  { %v1510_v52 = vpop.eup %1509  ;;  %1527 = vrcp.f32 %v749_v23  ;;  %v750_v30 = vadd.f32 1.0, %v1508_v26 }
 0x197   :  { %v1512_v29 = vpop.eup %1511  ;;  %1529 = vrcp.f32 %v781_v24  ;;  %v782_v33 = vadd.f32 1.0, %v1510_v52 }
 0x198   :  { %v1514_v35 = vpop.eup %1513  ;;  %1531 = vrcp.f32 %v750_v30  ;;  %v751_v55 = vadd.f32 1.0, %v1512_v29 }
 0x199   :  { %1533 = vrcp.f32 %v782_v33  ;;  %v783_v34 = vadd.f32 1.0, %v1514_v35 }
 0x19a   :  { %v1516_v36 = vpop.eup %1515  ;;  %1535 = vrcp.f32 %v751_v55 }
 0x19b   :  { %v1518_v37 = vpop.eup %1517  ;;  %938 = vst [vmem:[#allocation2 + $0xd0] sm:$0xff] %v1516_v36  ;;  %1537 = vrcp.f32 %v783_v34 }
 0x19c   :  { %v1520_v38 = vpop.eup %1519  ;;  %970 = vst [vmem:[#allocation2 + $0x1d0] sm:$0xff] %v1518_v37 }
 0x19d   :  { %v1522_v41 = vpop.eup %1521  ;;  %939 = vst [vmem:[#allocation2 + $0xd8] sm:$0xff] %v1520_v38 }
 0x19e   :  { %v1524_v42 = vpop.eup %1523  ;;  %971 = vst [vmem:[#allocation2 + $0x1d8] sm:$0xff] %v1522_v41 }
 0x19f   :  { %v1526_v47 = vpop.eup %1525  ;;  %940 = vst [vmem:[#allocation2 + $0xe0] sm:$0xff] %v1524_v42 }
 0x1a0   :  { %v1528_v48 = vpop.eup %1527  ;;  %972 = vst [vmem:[#allocation2 + $0x1e0] sm:$0xff] %v1526_v47 }
 0x1a1   :  { %v1530_v53 = vpop.eup %1529  ;;  %941 = vst [vmem:[#allocation2 + $0xe8] sm:$0xff] %v1528_v48 }
 0x1a2   :  { %v1532_v18 = vpop.eup %1531  ;;  %973 = vst [vmem:[#allocation2 + $0x1e8] sm:$0xff] %v1530_v53 }
 0x1a3   :  { %v1534_v54 = vpop.eup %1533  ;;  %942 = vst [vmem:[#allocation2 + $0xf0] sm:$0xff] %v1532_v18 }
 0x1a4   :  { %v1536_v22 = vpop.eup %1535  ;;  %974 = vst [vmem:[#allocation2 + $0x1f0] sm:$0xff] %v1534_v54 }
 0x1a5   :  { %v1538_v57 = vpop.eup %1537  ;;  %943 = vst [vmem:[#allocation2 + $0xf8] sm:$0xff] %v1536_v22 }
 0x1a6   :  { %975 = vst [vmem:[#allocation2 + $0x1f8] sm:$0xff] %v1538_v57 }
 0x1a7   :  { %1550 = shalt.err (!%p1547_p4)
}
 0x1a8   :  { %s1551_s26 = scalar_lea.hbm %s2046_s2, 8192 }
 0x1a9   :  { %p1552_p5 = scmp.ne.s32.totalorder %s2046_s2, %s1551_s26  ;;  %p1555_p6 = scmp.lt.u32.totalorder %s1551_s26, %s2046_s2 }
 0x1ab   :  { %p1557_p7 = pnand %p1555_p6, %p1552_p5 }
 0x1ad   :  { %1560 = shalt.err (!%p1557_p7)
}
 0x1ae   :  { %s1564_s3 = smov 256   ;;  %s1565_s4 = smov 16  }
 0x1af   :  { %987 = dma.vmem_to_hbm [thread:$0]  %s982_s23, 8192, %s2046_s2, [#allocation3], %s1564_s3, %s1564_s3, %s1565_s4  }
 0x1b0   :  { %1561 = dma.done.wait [#allocation3], 8192  }
 0x1b1   :  { %1562 = vsyncadd [#allocation3], 4294959104 }
 0x1b2   :  { %991 = vsyncpa [#allocation3], 1 }

</bundles_post_ra>
